<compile_context>
chip_gen: v5e
topology: v5e:2x2
jax: 0.10.0
libtpu: 0.0.40
codegen_flags: <defaults>
</compile_context>

<pallas_src>
import functools

import jax
import jax.numpy as jnp
from jax.experimental import pallas as pl
from jax.experimental.pallas import tpu as pltpu


def _focal_loss_kernel(logits_ref, targets_ref, alpha_ref, out_ref, *, gamma, n_total):
    i = pl.program_id(0)

    x = logits_ref[...].astype(jnp.float32)        # (TN, C)  upcast in-kernel (free VPU op)
    t = targets_ref[...]                           # (TN, 1)  int32 class ids
    a = alpha_ref[...].astype(jnp.float32)         # (1, C)   grid-invariant

    tn, c = x.shape

    # Rows past the true batch size (ragged last tile) are masked out of the reduction.
    row = i * tn + jax.lax.broadcasted_iota(jnp.int32, (tn, 1), 0)
    row_valid = row < n_total                      # (TN, 1) bool
    x = jnp.where(row_valid, x, 0.0)               # keep padded-garbage rows finite

    # One-hot class mask (equivalent of class_mask.scatter_(1, ids, 1.0)).
    col = jax.lax.broadcasted_iota(jnp.int32, (tn, c), 1)
    mask = (col == t).astype(jnp.float32)          # (TN, C)

    # Fused, numerically-stable log-softmax + gather:
    #   log_p = x[target] - m - log(sum(exp(x - m)))
    m = jnp.max(x, axis=1, keepdims=True)                      # (TN, 1)
    denom = jnp.sum(jnp.exp(x - m), axis=1, keepdims=True)     # (TN, 1)
    x_t = jnp.sum(x * mask, axis=1, keepdims=True)             # (TN, 1)
    log_p = (x_t - m) - jnp.log(denom)                         # (TN, 1)
    p_t = jnp.exp(log_p)                                       # (TN, 1)

    alpha_sel = jnp.sum(a * mask, axis=1, keepdims=True)       # (TN, 1)

    one_minus = 1.0 - p_t
    g = float(gamma)
    if g == int(g) and 0 <= int(g) <= 4:
        # Integer gamma (default 2): explicit multiply chain, no exp/log lowering.
        focal = jnp.ones_like(one_minus)
        for _ in range(int(g)):
            focal = focal * one_minus
    else:
        focal = jnp.power(one_minus, jnp.float32(g))

    loss = -alpha_sel * focal * log_p                          # (TN, 1)
    loss = jnp.where(row_valid, loss, 0.0)

    # Per-tile partial sum; combined (and averaged) outside the kernel.
    out_ref[...] = jnp.sum(loss).reshape(1, 1, 1)


def _pick_tile_n(n, c, itemsize):
    """Pick a batch-tile size whose double-buffered footprint stays VMEM-friendly
    even on v7x (64 MiB physical / 32 MiB scoped)."""
    budget_bytes = 4 * 1024 * 1024            # per logits block (x2 buffers + f32 temps)
    tn = budget_bytes // max(1, c * itemsize)
    tn = max(8, min(int(tn), 2048))
    tn = (tn // 8) * 8                        # keep second-minor dim 8-aligned
    if tn >= n:
        return n                              # single full-extent block
    return tn


def focal_loss(logits, targets, alpha=None, gamma=2.0, size_average=True, tile_n=None):
    """Pallas TPU implementation of FocalLoss.forward.

    logits:  (N, C) float (any float dtype; upcast to f32 inside the kernel)
    targets: (N,)   int   class indices
    alpha:   (C,) or (C, 1) float, defaults to ones (matches torch.ones(class_num, 1))
    returns: scalar float32 loss
    """
    n, c = logits.shape
    if alpha is None:
        alpha = jnp.ones((c,), dtype=jnp.float32)
    alpha = jnp.asarray(alpha, dtype=jnp.float32).reshape(1, c)   # lane-major
    targets2d = targets.astype(jnp.int32).reshape(n, 1)

    tn = tile_n if tile_n is not None else _pick_tile_n(n, c, logits.dtype.itemsize)
    tn = min(tn, n)
    num_tiles = pl.cdiv(n, tn)

    kernel = functools.partial(_focal_loss_kernel, gamma=float(gamma), n_total=n)

    partial_sums = pl.pallas_call(
        kernel,
        out_shape=jax.ShapeDtypeStruct((num_tiles, 1, 1), jnp.float32),
        grid_spec=pltpu.PrefetchScalarGridSpec(
            num_scalar_prefetch=0,
            grid=(num_tiles,),
            in_specs=[
                pl.BlockSpec((tn, c), lambda i: (i, 0)),   # logits tile (native dtype)
                pl.BlockSpec((tn, 1), lambda i: (i, 0)),   # targets tile
                pl.BlockSpec((1, c), lambda i: (0, 0)),    # alpha, grid-invariant
            ],
            out_specs=pl.BlockSpec((1, 1, 1), lambda i: (i, 0, 0)),
        ),
        compiler_params=pltpu.CompilerParams(
            dimension_semantics=("parallel",),             # batch-parallel partial sums
            vmem_limit_bytes=32 * 1024 * 1024,             # explicit, safe on v5e/v6e/v7x
        ),
    )(logits, targets2d, alpha)

    total = jnp.sum(partial_sums)
    if size_average:
        total = total / jnp.float32(n)
    return total


def _focal_loss_ref(logits, targets, alpha=None, gamma=2.0, size_average=True):
    """Pure-JAX reference mirroring the PyTorch module."""
    n, c = logits.shape
    if alpha is None:
        alpha = jnp.ones((c,), dtype=jnp.float32)
    alpha = jnp.asarray(alpha, dtype=jnp.float32).reshape(-1)
    p = jax.nn.softmax(logits.astype(jnp.float32), axis=1)
    mask = jax.nn.one_hot(targets, c, dtype=jnp.float32)
    probs = jnp.sum(p * mask, axis=1)
    alpha_sel = alpha[targets]
    batch_loss = -alpha_sel * (1.0 - probs) ** gamma * jnp.log(probs)
    return jnp.mean(batch_loss) if size_average else jnp.sum(batch_loss)


if __name__ == "__main__":
    key = jax.random.PRNGKey(0)

    # Case 1: small shape, single tile. batch N=8, classes C=16.
    k_logits, k_targets, k2_logits, k2_targets = jax.random.split(key, 4)
    N, C = 8, 16
    logits = jax.random.normal(k_logits, (N, C), dtype=jnp.float32)
    targets = jax.random.randint(k_targets, (N,), 0, C, dtype=jnp.int32)

    loss = focal_loss(logits, targets, alpha=None, gamma=2.0, size_average=True)
    loss = jax.block_until_ready(loss)
    ref = _focal_loss_ref(logits, targets, alpha=None, gamma=2.0, size_average=True)
    assert jnp.allclose(loss, ref, rtol=1e-5, atol=1e-6), (loss, ref)

    # Case 2: multi-tile path with a ragged last tile (N=20 not divisible by tile_n=8)
    # and a non-default alpha, size_average=False.
    N2, C2 = 20, 16
    logits2 = jax.random.normal(k2_logits, (N2, C2), dtype=jnp.float32)
    targets2 = jax.random.randint(k2_targets, (N2,), 0, C2, dtype=jnp.int32)
    alpha2 = jnp.linspace(0.25, 1.0, C2, dtype=jnp.float32)

    loss2 = focal_loss(logits2, targets2, alpha=alpha2, gamma=2.0,
                       size_average=False, tile_n=8)
    loss2 = jax.block_until_ready(loss2)
    ref2 = _focal_loss_ref(logits2, targets2, alpha=alpha2, gamma=2.0, size_average=False)
    assert jnp.allclose(loss2, ref2, rtol=1e-5, atol=1e-5), (loss2, ref2)

    print("KERNEL_OK")
</pallas_src>

<mosaic_0001>
module attributes {stable_mosaic.version = 11 : i64} {
  func.func @_focal_loss_kernel(%arg0: i32, %arg1: memref<8x16xf32, #tpu.memory_space<vmem>>, %arg2: memref<8x1xi32, #tpu.memory_space<vmem>>, %arg3: memref<1x16xf32, #tpu.memory_space<vmem>>, %arg4: memref<1x1x1xf32, #tpu.memory_space<vmem>>) attributes {dimension_semantics = [#tpu.dimension_semantics<parallel>], iteration_bounds = array<i64: 1>, scalar_prefetch = 0 : i64, scratch_operands = 0 : i64, tpu.core_type = #tpu.core_type<tc>, window_params = [{transform_indices = @transform_0, window_bounds = array<i64: 8, 16>}, {transform_indices = @transform_1, window_bounds = array<i64: 8, 1>}, {pipeline_mode = #tpu.pipeline_mode<synchronous>, transform_indices = @transform_2, window_bounds = array<i64: 1, 16>}, {transform_indices = @transform_3, window_bounds = array<i64: 1, 1, 1>}]} {
    %c0 = arith.constant 0 : index
    %c0_0 = arith.constant 0 : index
    %0 = vector.load %arg1[%c0, %c0_0] : memref<8x16xf32, #tpu.memory_space<vmem>>, vector<8x16xf32>
    %c0_1 = arith.constant 0 : index
    %c0_2 = arith.constant 0 : index
    %1 = vector.load %arg2[%c0_1, %c0_2] : memref<8x1xi32, #tpu.memory_space<vmem>>, vector<8x1xi32>
    %c0_3 = arith.constant 0 : index
    %c0_4 = arith.constant 0 : index
    %2 = vector.load %arg3[%c0_3, %c0_4] : memref<1x16xf32, #tpu.memory_space<vmem>>, vector<1x16xf32>
    %c8_i32 = arith.constant 8 : i32
    %3 = arith.muli %arg0, %c8_i32 : i32
    %4 = tpu.iota {dimensions = array<i32: 0>} : vector<8x1xi32>
    %5 = vector.broadcast %3 : i32 to vector<8x1xi32>
    %6 = arith.addi %5, %4 : vector<8x1xi32>
    %c8_i32_5 = arith.constant 8 : i32
    %7 = vector.broadcast %c8_i32_5 : i32 to vector<8x1xi32>
    %8 = arith.cmpi slt, %6, %7 : vector<8x1xi32>
    %cst = arith.constant 0.000000e+00 : f32
    %9 = vector.shape_cast %8 : vector<8x1xi1> to vector<8x1xi1>
    %10 = vector.broadcast %9 : vector<8x1xi1> to vector<8x16xi1>
    %11 = vector.broadcast %cst : f32 to vector<8x16xf32>
    %12 = arith.select %10, %0, %11 : vector<8x16xi1>, vector<8x16xf32>
    %13 = tpu.iota {dimensions = array<i32: 1>} : vector<8x16xi32>
    %14 = vector.broadcast %1 : vector<8x1xi32> to vector<8x16xi32>
    %15 = arith.cmpi eq, %13, %14 : vector<8x16xi32>
    %16 = arith.extui %15 : vector<8x16xi1> to vector<8x16xi32>
    %17 = arith.sitofp %16 : vector<8x16xi32> to vector<8x16xf32>
    %cst_6 = arith.constant dense<0xFF800000> : vector<8xf32>
    %18 = vector.multi_reduction <maximumf>, %12, %cst_6 [1] : vector<8x16xf32> to vector<8xf32>
    %19 = vector.shape_cast %18 : vector<8xf32> to vector<8x1xf32>
    %20 = vector.broadcast %19 : vector<8x1xf32> to vector<8x16xf32>
    %21 = arith.subf %12, %20 : vector<8x16xf32>
    %22 = math.exp %21 : vector<8x16xf32>
    %cst_7 = arith.constant dense<0.000000e+00> : vector<8xf32>
    %23 = vector.multi_reduction <add>, %22, %cst_7 [1] : vector<8x16xf32> to vector<8xf32>
    %24 = vector.shape_cast %23 : vector<8xf32> to vector<8x1xf32>
    %25 = arith.mulf %12, %17 : vector<8x16xf32>
    %cst_8 = arith.constant dense<0.000000e+00> : vector<8xf32>
    %26 = vector.multi_reduction <add>, %25, %cst_8 [1] : vector<8x16xf32> to vector<8xf32>
    %27 = vector.shape_cast %26 : vector<8xf32> to vector<8x1xf32>
    %28 = arith.subf %27, %19 : vector<8x1xf32>
    %29 = math.log %24 : vector<8x1xf32>
    %30 = arith.subf %28, %29 : vector<8x1xf32>
    %31 = math.exp %30 : vector<8x1xf32>
    %32 = vector.broadcast %2 : vector<1x16xf32> to vector<8x16xf32>
    %33 = arith.mulf %32, %17 : vector<8x16xf32>
    %cst_9 = arith.constant dense<0.000000e+00> : vector<8xf32>
    %34 = vector.multi_reduction <add>, %33, %cst_9 [1] : vector<8x16xf32> to vector<8xf32>
    %35 = vector.shape_cast %34 : vector<8xf32> to vector<8x1xf32>
    %cst_10 = arith.constant 1.000000e+00 : f32
    %36 = vector.broadcast %cst_10 : f32 to vector<8x1xf32>
    %37 = arith.subf %36, %31 : vector<8x1xf32>
    %cst_11 = arith.constant 1.000000e+00 : f32
    %38 = vector.broadcast %cst_11 : f32 to vector<8x1xf32>
    %39 = arith.mulf %38, %37 : vector<8x1xf32>
    %40 = arith.mulf %39, %37 : vector<8x1xf32>
    %cst_12 = arith.constant 0.000000e+00 : f32
    %41 = vector.broadcast %cst_12 : f32 to vector<8x1xf32>
    %42 = arith.subf %41, %35 : vector<8x1xf32>
    %43 = arith.mulf %42, %40 : vector<8x1xf32>
    %44 = arith.mulf %43, %30 : vector<8x1xf32>
    %cst_13 = arith.constant 0.000000e+00 : f32
    %45 = vector.broadcast %cst_13 : f32 to vector<8x1xf32>
    %46 = arith.select %8, %44, %45 : vector<8x1xi1>, vector<8x1xf32>
    %47 = vector.shape_cast %46 : vector<8x1xf32> to vector<1x8x1xf32>
    %cst_14 = arith.constant dense<0.000000e+00> : vector<1xf32>
    %48 = vector.multi_reduction <add>, %47, %cst_14 [1, 2] : vector<1x8x1xf32> to vector<1xf32>
    %49 = vector.shape_cast %48 : vector<1xf32> to vector<1x1x1xf32>
    %50 = vector.extract %49[0, 0, 0] : f32 from vector<1x1x1xf32>
    %51 = vector.broadcast %50 : f32 to vector<1x1x1xf32>
    %c0_15 = arith.constant 0 : index
    %c0_16 = arith.constant 0 : index
    %c0_17 = arith.constant 0 : index
    %52 = vector.load %arg4[%c0_15, %c0_16, %c0_17] : memref<1x1x1xf32, #tpu.memory_space<vmem>>, vector<1x1x1xf32>
    tpu.vector_store %arg4[%c0_15, %c0_16, %c0_17], %51 {strides = array<i32>} : memref<1x1x1xf32, #tpu.memory_space<vmem>>, vector<1x1x1xf32>,
    return
  }
  func.func @transform_0(%arg0: i32) -> (i32, i32) {
    %c0_i32 = arith.constant 0 : i32
    %c0_i32_0 = arith.constant 0 : i32
    return %arg0, %c0_i32 : i32, i32
  }
  func.func @transform_1(%arg0: i32) -> (i32, i32) {
    %c0_i32 = arith.constant 0 : i32
    %c0_i32_0 = arith.constant 0 : i32
    return %arg0, %c0_i32 : i32, i32
  }
  func.func @transform_2(%arg0: i32) -> (i32, i32) {
    %c0_i32 = arith.constant 0 : i32
    %c0_i32_0 = arith.constant 0 : i32
    %c0_i32_1 = arith.constant 0 : i32
    return %c0_i32, %c0_i32_0 : i32, i32
  }
  func.func @transform_3(%arg0: i32) -> (i32, i32, i32) {
    %c0_i32 = arith.constant 0 : i32
    %c0_i32_0 = arith.constant 0 : i32
    %c0_i32_1 = arith.constant 0 : i32
    return %arg0, %c0_i32, %c0_i32_0 : i32, i32, i32
  }
}

</mosaic_0001>

<bundles_post_ra>
// kernel: tpu_custom_call.1
= control target key start
LH: loop header
LB: loop body
LE: loop exit
PB: predicated region body
PF: predicated region fallthrough
CT: control target
= control target key end

     0   :  { %vm35_vm0 = vcmask 130048   ;;  %v138_v2 = vmov 0   ;;  %s177_s0 = inlined_call_operand.vmem [shape: f32[8,16], index: 0, kind: input, shape index: {}]   ;;  %s178_s1 = inlined_call_operand.vmem [shape: s32[8,1], index: 1, kind: input, shape index: {}]   ;;  %s179_s2 = inlined_call_operand.vmem [shape: f32[1,16], index: 2, kind: input, shape index: {}]   ;;  %s180_s3 = inlined_call_operand.hbm [shape: f32[1,1,1], index: 3, kind: output, shape index: {}]  }
   0x1   :  { %v15_v0 = vld [vmem:[%s177_s0] sm:$0xff]  ;;  %104 = vset.pattern.permute.xlu0 %v138_v2 }
   0x2   :  { %v36_v1 = vsel %vm35_vm0, %v15_v0, -inf }
   0x3   :  { %8 = vsyncpa [#allocation3], 0  ;;  %37 = vmax.xlane.f32.xlu0 %v36_v1  ;;  %v16_v3 = vld [vmem:[%s178_s1] sm:$0xff]  ;;  %v27_v9 = vlaneseq  ;;  %v139_v13 = vmov 0.0   ;;  %vm68_vm2 = vcmask 7168   ;;  %s140_s1 = smov [#allocation2]  }
   0x4   :  { %v105_v11 = vld [vmem:[%s179_s2] ss:$0 sm:$0xff]  ;;  %s87_s2 = sshll.u32 %s140_s1, 4  ;;  %s89_s19 = sshll.u32 %s180_s3, 4  ;;  %vm80_vm3 = vcmask 0   ;;  %s88_s2 = int_to_ptr.vmem [resolvable:$true] %s87_s2  ;;  %s90_s19 = int_to_ptr.hbm [resolvable:$true] %s89_s19 }
   0x5   :  { %v28_v10 = vand.u32 127, %v27_v9 }
  0x17   :  { %30 = vperm.xlu0 %104, %v16_v3  }
  0x76   :  { %v38_v4 = vpop.xlane.xlu0 %37 }
  0x77   :  { %v39_v5 = vsub.f32 %v15_v0, %v38_v4 }
  0x79   :  { %v40_v6 = vmul.f32 1.442695, %v39_v5 }
  0x7b   :  { %106 = vpow2.f32 %v40_v6 }
  0x81   :  { %v107_v7 = vpop.eup %106 }
  0x82   :  { %v42_v8 = vsel %vm35_vm0, %v107_v7, 0.0 }
  0x83   :  { %43 = vadd.xlane.f32.xlu1 %v42_v8 }
  0x89   :  { %v31_v12 = vpop.permute.xlu0 %30 }
  0x8a   :  { %vm32_vm1 = vcmp.eq.s32.totalorder %v28_v10, %v31_v12 }
  0x8b   :  { %v98_v14 = vsel %vm32_vm1, 1.0, %v139_v13 }
  0x8c   :  { %v58_v15 = vmul.f32 %v105_v11, %v98_v14  ;;  %v45_v16 = vmul.f32 %v98_v14, %v15_v0 }
  0x8e   :  { %v59_v17 = vsel %vm35_vm0, %v58_v15, 0.0  ;;  %v46_v18 = vsel %vm35_vm0, %v45_v16, 0.0 }
  0x8f   :  { %60 = vadd.xlane.f32.xlu2 %v59_v17  ;;  %47 = vadd.xlane.f32.xlu1 %v46_v18 }
  0xf6   :  { %v44_v19 = vpop.xlane.xlu1 %43 }
  0xf7   :  { %108 = vlog2.f32 %v44_v19 }
  0xfd   :  { %v109_v20 = vpop.eup %108 }
  0xfe   :  { %v51_v22 = vmul.f32 0.6931472, %v109_v20 }
 0x102   :  { %v48_v21 = vpop.xlane.xlu1 %47  ;;  %v61_v27 = vpop.xlane.xlu2 %60 }
 0x103   :  { %v49_v23 = vsub.f32 %v48_v21, %v38_v4  ;;  %v64_v29 = vsub.f32 0.0, %v61_v27 }
 0x105   :  { %v52_v24 = vsub.f32 %v49_v23, %v51_v22 }
 0x107   :  { %v53_v25 = vmul.f32 1.442695, %v52_v24 }
 0x109   :  { %110 = vpow2.f32 %v53_v25 }
 0x10f   :  { %v111_v26 = vpop.eup %110 }
 0x110   :  { %v62_v28 = vsub.f32 1.0, %v111_v26 }
 0x112   :  { %v63_v30 = vmul.f32 %v62_v28, %v62_v28 }
 0x114   :  { %v65_v31 = vmul.f32 %v64_v29, %v63_v30 }
 0x116   :  { %v66_v32 = vmul.f32 %v65_v31, %v52_v24 }
 0x118   :  { %v69_v33 = vsel %vm68_vm2, %v66_v32, 0.0 }
 0x119   :  { %70 = vadd.xlane.f32.xlu2 %v69_v33 }
 0x18c   :  { %v71_v34 = vpop.xlane.xlu2 %70 }
 0x18d   :  { %v72_v35 = vrot.slane %v71_v34, 4 }
 0x18f   :  { %v73_v36 = vadd.f32 %v72_v35, %v71_v34 }
 0x191   :  { %v74_v37 = vrot.slane %v73_v36, 2 }
 0x193   :  { %v75_v38 = vadd.f32 %v74_v37, %v73_v36 }
 0x195   :  { %v76_v39 = vrot.slane %v75_v38, 1 }
 0x197   :  { %v77_v40 = vadd.f32 %v76_v39, %v75_v38 }
 0x199   :  { %99 = vpush %v77_v40 }
 0x1ca   :  { %s100_s20 = spop %99 }
 0x1cb   :  { %v79_v41 = vstv %s100_s20 }
 0x1cc   :  { %81 = vst.msk [vmem:[#allocation2] sm:$0x1] %vm80_vm3, %v79_v41 }
 0x1cd   :  { %92 = dma.vmem_to_hbm [thread:$0]  %s88_s2, 16, %s90_s19, [#allocation3]  }
 0x1ce   :  { %136 = dma.done.wait [#allocation3], 16  }
 0x1cf   :  { %137 = vsyncadd [#allocation3], 4294967280 }
 0x1d0   :  { %97 = vsyncpa [#allocation3], 1 }

</bundles_post_ra>
